<compile_context>
chip_gen: v7x
topology: tpu7x:2x2x1
jax: 0.10.0
libtpu: 0.0.40
codegen_flags: <defaults>
</compile_context>

<pallas_src>
import jax
import jax.numpy as jnp
from jax.experimental import pallas as pl
from jax.experimental.pallas import tpu as pltpu

EPS = 1e-5


def _bottleneck_kernel(x_ref, w1_ref, t1_ref, w2_ref, t2_ref, w3_ref, t3_ref,
                       out_ref, res2_ref):
    # x_ref block: (Cin, L) f32  (leading batch dim squeezed by the BlockSpec)
    x_f32 = x_ref[...]
    x = x_f32.astype(jnp.bfloat16)

    # ---- conv1 (1x1) + BN1 + ReLU (BN scale folded into w1; dropout = id) ----
    h1 = jnp.dot(w1_ref[...], x, preferred_element_type=jnp.float32)
    h1 = jnp.maximum(h1 + t1_ref[...], 0.0)                      # (Cm, L) f32

    # ---- conv2 (k=3, padding=1) + BN2 + ReLU ----
    # Build the +/-1 shifted taps with static lane slices and a zero boundary
    # column (== zero padding).  No L x L shift matrices, no L^2 temporaries.
    h1b = h1.astype(jnp.bfloat16)
    zcol = jnp.zeros((h1b.shape[0], 1), dtype=jnp.bfloat16)
    h1_prev = jnp.concatenate([zcol, h1b[:, :-1]], axis=1)       # col l sees h1[l-1]
    h1_next = jnp.concatenate([h1b[:, 1:], zcol], axis=1)        # col l sees h1[l+1]
    taps = jnp.concatenate([h1_prev, h1b, h1_next], axis=0)      # (3*Cm, L)

    # Single fused matmul for all three taps: (Cm, 3*Cm) @ (3*Cm, L).
    c2 = jnp.dot(w2_ref[...], taps, preferred_element_type=jnp.float32)
    h2 = jnp.maximum(c2 + t2_ref[...], 0.0)                      # (Cm, L) f32
    res2_ref[...] = h2.astype(res2_ref.dtype)                    # residual_2

    # ---- conv3 (1x1) + BN3 + ReLU + residual add ----
    h3 = jnp.dot(w3_ref[...], h2.astype(jnp.bfloat16),
                 preferred_element_type=jnp.float32)
    h3 = jnp.maximum(h3 + t3_ref[...], 0.0)
    out_ref[...] = (h3 + x_f32).astype(out_ref.dtype)


def bottleneck_forward(x_ncl, params):
    """x_ncl: (B, Cin, L) float32 (PyTorch NCL). Returns (out_ncl, res2_ncl)."""
    (w1, b1, g1, be1, m1, v1,
     w2, b2, g2, be2, m2, v2,
     w3, b3, g3, be3, m3, v3) = params

    B, Cin, L = x_ncl.shape
    Cm = w1.shape[0]
    Cout = w3.shape[0]

    # BatchNorm (inference) folding:
    #   bn(conv(x)) = conv_nobias(x) * s + ((bias - mean) * s + beta),
    #   s = gamma / sqrt(var + eps).
    # The per-output-channel scale s is folded into the conv weights here so
    # the kernel only does an add + ReLU per element.
    def fold(bias, gamma, beta, mean, var):
        s = gamma / jnp.sqrt(var + EPS)
        t = (bias - mean) * s + beta
        return s, t

    s1, t1 = fold(b1, g1, be1, m1, v1)
    s2, t2 = fold(b2, g2, be2, m2, v2)
    s3, t3 = fold(b3, g3, be3, m3, v3)

    # Weight prep (BN scale folded into rows, bf16 for the MXU):
    w1e = (w1[:, :, 0] * s1[:, None]).astype(jnp.bfloat16)               # (Cm, Cin)
    w2cat = jnp.concatenate([w2[:, :, 0], w2[:, :, 1], w2[:, :, 2]], axis=1)
    w2e = (w2cat * s2[:, None]).astype(jnp.bfloat16)                     # (Cm, 3*Cm)
    w3e = (w3[:, :, 0] * s3[:, None]).astype(jnp.bfloat16)               # (Cout, Cm)

    t1c = t1.reshape(Cm, 1).astype(jnp.float32)
    t2c = t2.reshape(Cm, 1).astype(jnp.float32)
    t3c = t3.reshape(Cout, 1).astype(jnp.float32)

    x_f32 = x_ncl.astype(jnp.float32)   # no layout transpose: NCL used directly

    # Constant index maps -> weight tiles stay VMEM-resident across the grid.
    full = lambda shape: pl.BlockSpec(shape, lambda b: (0,) * len(shape))

    out_ncl, res2_ncl = pl.pallas_call(
        _bottleneck_kernel,
        grid=(B,),
        in_specs=[
            pl.BlockSpec((None, Cin, L), lambda b: (b, 0, 0)),
            full((Cm, Cin)), full((Cm, 1)),
            full((Cm, 3 * Cm)), full((Cm, 1)),
            full((Cout, Cm)), full((Cout, 1)),
        ],
        out_specs=[
            pl.BlockSpec((None, Cout, L), lambda b: (b, 0, 0)),
            pl.BlockSpec((None, Cm, L), lambda b: (b, 0, 0)),
        ],
        out_shape=(
            jax.ShapeDtypeStruct((B, Cout, L), jnp.float32),
            jax.ShapeDtypeStruct((B, Cm, L), jnp.float32),
        ),
        compiler_params=pltpu.CompilerParams(
            dimension_semantics=("parallel",),      # batch iterations independent
            vmem_limit_bytes=32 * 1024 * 1024),     # safe on v5e/v6e/v7x
    )(x_f32, w1e, t1c, w2e, t2c, w3e, t3c)

    return out_ncl, res2_ncl


def bottleneck_reference(x_ncl, params):
    """Pure-JAX reference mirroring the PyTorch forward (inference mode)."""
    (w1, b1, g1, be1, m1, v1,
     w2, b2, g2, be2, m2, v2,
     w3, b3, g3, be3, m3, v3) = params

    def conv1d(x, w, b, pad):
        y = jax.lax.conv_general_dilated(
            x, w, window_strides=(1,), padding=[(pad, pad)],
            dimension_numbers=('NCH', 'OIH', 'NCH'))
        return y + b[None, :, None]

    def bn(x, gamma, beta, mean, var):
        return ((x - mean[None, :, None]) / jnp.sqrt(var[None, :, None] + EPS)
                * gamma[None, :, None] + beta[None, :, None])

    h = jax.nn.relu(bn(conv1d(x_ncl, w1, b1, 0), g1, be1, m1, v1))
    h = jax.nn.relu(bn(conv1d(h, w2, b2, 1), g2, be2, m2, v2))
    res2 = h
    h = jax.nn.relu(bn(conv1d(h, w3, b3, 0), g3, be3, m3, v3))
    return h + x_ncl, res2


def make_params(key, in_channels, mid_channels, out_channels):
    ks = jax.random.split(key, 18)
    def w(k, shape, scale=0.2):
        return (scale * jax.random.normal(k, shape)).astype(jnp.float32)
    def pos(k, n):
        return jax.random.uniform(k, (n,), minval=0.5, maxval=1.5).astype(jnp.float32)
    # conv1 / bn1
    w1 = w(ks[0], (mid_channels, in_channels, 1)); b1 = w(ks[1], (mid_channels,))
    g1 = pos(ks[2], mid_channels); be1 = w(ks[3], (mid_channels,), 0.1)
    m1 = w(ks[4], (mid_channels,), 0.1); v1 = pos(ks[5], mid_channels)
    # conv2 / bn2
    w2 = w(ks[6], (mid_channels, mid_channels, 3)); b2 = w(ks[7], (mid_channels,))
    g2 = pos(ks[8], mid_channels); be2 = w(ks[9], (mid_channels,), 0.1)
    m2 = w(ks[10], (mid_channels,), 0.1); v2 = pos(ks[11], mid_channels)
    # conv3 / bn3
    w3 = w(ks[12], (out_channels, mid_channels, 1)); b3 = w(ks[13], (out_channels,))
    g3 = pos(ks[14], out_channels); be3 = w(ks[15], (out_channels,), 0.1)
    m3 = w(ks[16], (out_channels,), 0.1); v3 = pos(ks[17], out_channels)
    return (w1, b1, g1, be1, m1, v1,
            w2, b2, g2, be2, m2, v2,
            w3, b3, g3, be3, m3, v3)


if __name__ == "__main__":
    B, Cin, Cmid, Cout, L = 2, 4, 8, 4, 16   # residual add requires Cout == Cin
    key = jax.random.PRNGKey(0)
    kx, kp = jax.random.split(key)
    x = jax.random.normal(kx, (B, Cin, L), dtype=jnp.float32)
    params = make_params(kp, Cin, Cmid, Cout)

    out, res2 = jax.block_until_ready(bottleneck_forward(x, params))
    out_ref, res2_ref = bottleneck_reference(x, params)

    assert out.shape == (B, Cout, L) and res2.shape == (B, Cmid, L)
    # bf16 matmul operands with f32 accumulation -> relaxed tolerance vs f32 ref.
    assert jnp.allclose(out, out_ref, atol=2e-2, rtol=2e-2)
    assert jnp.allclose(res2, res2_ref, atol=2e-2, rtol=2e-2)
    print("KERNEL_OK")
</pallas_src>

<mosaic_0001>
module attributes {stable_mosaic.version = 11 : i64} {
  func.func @_bottleneck_kernel(%arg0: i32, %arg1: memref<1x4x16xf32, #tpu.memory_space<vmem>>, %arg2: memref<8x4xbf16, #tpu.memory_space<vmem>>, %arg3: memref<8x1xf32, #tpu.memory_space<vmem>>, %arg4: memref<8x24xbf16, #tpu.memory_space<vmem>>, %arg5: memref<8x1xf32, #tpu.memory_space<vmem>>, %arg6: memref<4x8xbf16, #tpu.memory_space<vmem>>, %arg7: memref<4x1xf32, #tpu.memory_space<vmem>>, %arg8: memref<1x4x16xf32, #tpu.memory_space<vmem>>, %arg9: memref<1x8x16xf32, #tpu.memory_space<vmem>>) attributes {dimension_semantics = [#tpu.dimension_semantics<parallel>], iteration_bounds = array<i64: 2>, scalar_prefetch = 0 : i64, scratch_operands = 0 : i64, tpu.core_type = #tpu.core_type<tc>, window_params = [{transform_indices = @transform_0, window_bounds = array<i64: 1, 4, 16>}, {pipeline_mode = #tpu.pipeline_mode<synchronous>, transform_indices = @transform_1, window_bounds = array<i64: 8, 4>}, {pipeline_mode = #tpu.pipeline_mode<synchronous>, transform_indices = @transform_2, window_bounds = array<i64: 8, 1>}, {pipeline_mode = #tpu.pipeline_mode<synchronous>, transform_indices = @transform_3, window_bounds = array<i64: 8, 24>}, {pipeline_mode = #tpu.pipeline_mode<synchronous>, transform_indices = @transform_4, window_bounds = array<i64: 8, 1>}, {pipeline_mode = #tpu.pipeline_mode<synchronous>, transform_indices = @transform_5, window_bounds = array<i64: 4, 8>}, {pipeline_mode = #tpu.pipeline_mode<synchronous>, transform_indices = @transform_6, window_bounds = array<i64: 4, 1>}, {transform_indices = @transform_7, window_bounds = array<i64: 1, 4, 16>}, {transform_indices = @transform_8, window_bounds = array<i64: 1, 8, 16>}]} {
    %c0 = arith.constant 0 : index
    %c0_0 = arith.constant 0 : index
    %c0_1 = arith.constant 0 : index
    %0 = vector.load %arg1[%c0, %c0_0, %c0_1] : memref<1x4x16xf32, #tpu.memory_space<vmem>>, vector<1x4x16xf32>
    %1 = vector.shape_cast %0 : vector<1x4x16xf32> to vector<4x16xf32>
    %2 = arith.truncf %1 : vector<4x16xf32> to vector<4x16xbf16>
    %c0_2 = arith.constant 0 : index
    %c0_3 = arith.constant 0 : index
    %3 = vector.load %arg2[%c0_2, %c0_3] : memref<8x4xbf16, #tpu.memory_space<vmem>>, vector<8x4xbf16>
    %cst = arith.constant dense<0.000000e+00> : vector<8x16xf32>
    %4 = tpu.matmul %3, %2, %cst {dimension_numbers = #tpu.dot_dimension_numbers<[1], [0], [0], [1], [0, 0, 1, 1], [], []>} : vector<8x4xbf16>, vector<4x16xbf16>, vector<8x16xf32> -> vector<8x16xf32>
    %c0_4 = arith.constant 0 : index
    %c0_5 = arith.constant 0 : index
    %5 = vector.load %arg3[%c0_4, %c0_5] : memref<8x1xf32, #tpu.memory_space<vmem>>, vector<8x1xf32>
    %6 = vector.broadcast %5 : vector<8x1xf32> to vector<8x16xf32>
    %7 = arith.addf %4, %6 : vector<8x16xf32>
    %cst_6 = arith.constant 0.000000e+00 : f32
    %8 = vector.broadcast %cst_6 : f32 to vector<8x16xf32>
    %9 = arith.maximumf %7, %8 : vector<8x16xf32>
    %10 = arith.truncf %9 : vector<8x16xf32> to vector<8x16xbf16>
    %cst_7 = arith.constant 0.000000e+00 : bf16
    %11 = vector.broadcast %cst_7 : bf16 to vector<8x1xbf16>
    %12 = vector.extract_strided_slice %10 {offsets = [0, 0], sizes = [8, 15], strides = [1, 1]} : vector<8x16xbf16> to vector<8x15xbf16>
    %13 = tpu.concatenate %11, %12 in 1 : vector<8x1xbf16>, vector<8x15xbf16> -> vector<8x16xbf16>
    %14 = vector.extract_strided_slice %10 {offsets = [0, 1], sizes = [8, 15], strides = [1, 1]} : vector<8x16xbf16> to vector<8x15xbf16>
    %15 = tpu.concatenate %14, %11 in 1 : vector<8x15xbf16>, vector<8x1xbf16> -> vector<8x16xbf16>
    %16 = tpu.concatenate %13, %10, %15 in 0 : vector<8x16xbf16>, vector<8x16xbf16>, vector<8x16xbf16> -> vector<24x16xbf16>
    %c0_8 = arith.constant 0 : index
    %c0_9 = arith.constant 0 : index
    %17 = vector.load %arg4[%c0_8, %c0_9] : memref<8x24xbf16, #tpu.memory_space<vmem>>, vector<8x24xbf16>
    %cst_10 = arith.constant dense<0.000000e+00> : vector<8x16xf32>
    %18 = tpu.matmul %17, %16, %cst_10 {dimension_numbers = #tpu.dot_dimension_numbers<[1], [0], [0], [1], [0, 0, 1, 1], [], []>} : vector<8x24xbf16>, vector<24x16xbf16>, vector<8x16xf32> -> vector<8x16xf32>
    %c0_11 = arith.constant 0 : index
    %c0_12 = arith.constant 0 : index
    %19 = vector.load %arg5[%c0_11, %c0_12] : memref<8x1xf32, #tpu.memory_space<vmem>>, vector<8x1xf32>
    %20 = vector.broadcast %19 : vector<8x1xf32> to vector<8x16xf32>
    %21 = arith.addf %18, %20 : vector<8x16xf32>
    %cst_13 = arith.constant 0.000000e+00 : f32
    %22 = vector.broadcast %cst_13 : f32 to vector<8x16xf32>
    %23 = arith.maximumf %21, %22 : vector<8x16xf32>
    %c0_14 = arith.constant 0 : index
    %c0_15 = arith.constant 0 : index
    %c0_16 = arith.constant 0 : index
    %24 = vector.load %arg9[%c0_14, %c0_15, %c0_16] : memref<1x8x16xf32, #tpu.memory_space<vmem>>, vector<1x8x16xf32>
    %25 = vector.shape_cast %24 : vector<1x8x16xf32> to vector<8x16xf32>
    %26 = vector.shape_cast %23 : vector<8x16xf32> to vector<1x8x16xf32>
    tpu.vector_store %arg9[%c0_14, %c0_15, %c0_16], %26 {strides = array<i32>} : memref<1x8x16xf32, #tpu.memory_space<vmem>>, vector<1x8x16xf32>,
    %c0_17 = arith.constant 0 : index
    %c0_18 = arith.constant 0 : index
    %27 = vector.load %arg6[%c0_17, %c0_18] : memref<4x8xbf16, #tpu.memory_space<vmem>>, vector<4x8xbf16>
    %28 = arith.truncf %23 : vector<8x16xf32> to vector<8x16xbf16>
    %cst_19 = arith.constant dense<0.000000e+00> : vector<4x16xf32>
    %29 = tpu.matmul %27, %28, %cst_19 {dimension_numbers = #tpu.dot_dimension_numbers<[1], [0], [0], [1], [0, 0, 1, 1], [], []>} : vector<4x8xbf16>, vector<8x16xbf16>, vector<4x16xf32> -> vector<4x16xf32>
    %c0_20 = arith.constant 0 : index
    %c0_21 = arith.constant 0 : index
    %30 = vector.load %arg7[%c0_20, %c0_21] : memref<4x1xf32, #tpu.memory_space<vmem>>, vector<4x1xf32>
    %31 = vector.broadcast %30 : vector<4x1xf32> to vector<4x16xf32>
    %32 = arith.addf %29, %31 : vector<4x16xf32>
    %cst_22 = arith.constant 0.000000e+00 : f32
    %33 = vector.broadcast %cst_22 : f32 to vector<4x16xf32>
    %34 = arith.maximumf %32, %33 : vector<4x16xf32>
    %35 = arith.addf %34, %1 : vector<4x16xf32>
    %c0_23 = arith.constant 0 : index
    %c0_24 = arith.constant 0 : index
    %c0_25 = arith.constant 0 : index
    %36 = vector.load %arg8[%c0_23, %c0_24, %c0_25] : memref<1x4x16xf32, #tpu.memory_space<vmem>>, vector<1x4x16xf32>
    %37 = vector.shape_cast %36 : vector<1x4x16xf32> to vector<4x16xf32>
    %38 = vector.shape_cast %35 : vector<4x16xf32> to vector<1x4x16xf32>
    tpu.vector_store %arg8[%c0_23, %c0_24, %c0_25], %38 {strides = array<i32>} : memref<1x4x16xf32, #tpu.memory_space<vmem>>, vector<1x4x16xf32>,
    return
  }
  func.func @transform_0(%arg0: i32) -> (i32, i32, i32) {
    %c0_i32 = arith.constant 0 : i32
    %c0_i32_0 = arith.constant 0 : i32
    %c0_i32_1 = arith.constant 0 : i32
    return %arg0, %c0_i32, %c0_i32_0 : i32, i32, i32
  }
  func.func @transform_1(%arg0: i32) -> (i32, i32) {
    %c0_i32 = arith.constant 0 : i32
    %c0_i32_0 = arith.constant 0 : i32
    %c0_i32_1 = arith.constant 0 : i32
    return %c0_i32, %c0_i32_0 : i32, i32
  }
  func.func @transform_2(%arg0: i32) -> (i32, i32) {
    %c0_i32 = arith.constant 0 : i32
    %c0_i32_0 = arith.constant 0 : i32
    %c0_i32_1 = arith.constant 0 : i32
    return %c0_i32, %c0_i32_0 : i32, i32
  }
  func.func @transform_3(%arg0: i32) -> (i32, i32) {
    %c0_i32 = arith.constant 0 : i32
    %c0_i32_0 = arith.constant 0 : i32
    %c0_i32_1 = arith.constant 0 : i32
    return %c0_i32, %c0_i32_0 : i32, i32
  }
  func.func @transform_4(%arg0: i32) -> (i32, i32) {
    %c0_i32 = arith.constant 0 : i32
    %c0_i32_0 = arith.constant 0 : i32
    %c0_i32_1 = arith.constant 0 : i32
    return %c0_i32, %c0_i32_0 : i32, i32
  }
  func.func @transform_5(%arg0: i32) -> (i32, i32) {
    %c0_i32 = arith.constant 0 : i32
    %c0_i32_0 = arith.constant 0 : i32
    %c0_i32_1 = arith.constant 0 : i32
    return %c0_i32, %c0_i32_0 : i32, i32
  }
  func.func @transform_6(%arg0: i32) -> (i32, i32) {
    %c0_i32 = arith.constant 0 : i32
    %c0_i32_0 = arith.constant 0 : i32
    %c0_i32_1 = arith.constant 0 : i32
    return %c0_i32, %c0_i32_0 : i32, i32
  }
  func.func @transform_7(%arg0: i32) -> (i32, i32, i32) {
    %c0_i32 = arith.constant 0 : i32
    %c0_i32_0 = arith.constant 0 : i32
    %c0_i32_1 = arith.constant 0 : i32
    return %arg0, %c0_i32, %c0_i32_0 : i32, i32, i32
  }
  func.func @transform_8(%arg0: i32) -> (i32, i32, i32) {
    %c0_i32 = arith.constant 0 : i32
    %c0_i32_0 = arith.constant 0 : i32
    %c0_i32_1 = arith.constant 0 : i32
    return %arg0, %c0_i32, %c0_i32_0 : i32, i32, i32
  }
}

</mosaic_0001>

<bundles_post_ra>
// kernel: tpu_custom_call.1
= control target key start
LH: loop header
LB: loop body
LE: loop exit
PB: predicated region body
PF: predicated region fallthrough
CT: control target
= control target key end

     0   :  { %14 = vsyncpa [#allocation3], 0  ;;  %s1027_s0 = inlined_call_operand.vmem [shape: f32[2,4,16], index: 0, kind: input, shape index: {}]   ;;  %s1028_s1 = inlined_call_operand.vmem [shape: bf16[8,4], index: 1, kind: input, shape index: {}]   ;;  %s1029_s2 = inlined_call_operand.vmem [shape: f32[8,1], index: 2, kind: input, shape index: {}]   ;;  %s1030_s3 = inlined_call_operand.vmem [shape: bf16[8,24], index: 3, kind: input, shape index: {}]   ;;  %s1031_s4 = inlined_call_operand.vmem [shape: f32[8,1], index: 4, kind: input, shape index: {}]   ;;  %s1032_s5 = inlined_call_operand.vmem [shape: bf16[4,8], index: 5, kind: input, shape index: {}]   ;;  %s1033_s6 = inlined_call_operand.vmem [shape: f32[4,1], index: 6, kind: input, shape index: {}]   ;;  %s1034_s7 = inlined_call_operand.hbm [shape: f32[2,4,16], index: 7, kind: output, shape index: {0}]   ;;  %s1035_s8 = inlined_call_operand.hbm [shape: f32[2,8,16], index: 8, kind: output, shape index: {1}]  }
   0x1   :  { %16 = vsyncpa [#allocation3 + $0x1], 0 }
   0x2   :  { %17 = vsyncpa [#allocation5], 0 }
   0x3   :  { %19 = vsyncpa [#allocation5 + $0x1], 0  ;;  %s869_s27 = smov 0   ;;  %s871_s28 = smov 0  }
   0x4   :  { %s873_s29 = smov 0   ;;  %s875_s30 = smov 0  }
   0x5 LB: > { %s890_s9 = sadd.s32 4294967295, %s815_s30   ;;  %s627_s10 = sadd.s32 4294967294, %s815_s30   ;;  %s815_s30 = sphi %s875_s30, %s1041_s30   ;;  %s811_s29 = sphi %s873_s29, %s1040_s29   ;;  %s807_s28 = sphi %s871_s28, %s1039_s28   ;;  %s803_s27 = sphi %s869_s27, %s1038_s27  }
   0x6   : > { %s894_s11 = sadd.s32 1, %s815_s30   ;;  %s184_s12 = sadd.s32 1, %s811_s29 }
   0x7   : > { %s181_s13 = ssub.s32 %s815_s30, %s894_s11  ;;  %p194_p0 = scmp.ne.s32.totalorder %s811_s29, %s807_s28 }
   0x8   : > { %p182_p1 = scmp.eq.s32.totalorder %s181_s13, 0  ;;  %p195_p2 = scmp.eq.s32.totalorder %s890_s9, 1 }
   0x9   : > { %p200_p3 = scmp.ne.s32.totalorder %s807_s28, %s803_s27  ;;  %p201_p4 = scmp.eq.s32.totalorder %s627_s10, 1 }
   0xa   : > { %s905_s14 = scalar_select %p182_p1, %s811_s29, %s184_s12  }
   0xb   : > { %p907_p5 = por %p195_p2, %p194_p0  ;;  %p911_p6 = por %p201_p4, %p200_p3 }
   0xc   : > { %p630_p7 = scmp.ge.s32.totalorder %s815_s30, 1  ;;  %p270_p8 = scmp.lt.s32.totalorder %s815_s30, 3 }
   0xe   : > { %p271_p9 = pnand %p630_p7, %p270_p8 }
   0xf   : > { %p308_p10 = scmp.lt.s32.totalorder (!%p271_p9), %s890_s9, 1  ;;  %v817_v0 = vmov (!%p271_p9), 0.0   ;;  %vm818_vm0 = vmmov (!%p271_p9), 0   ;;  %v316_v1 = vld [vmem:[%s1029_s2] sm:$0xff] (!%p271_p9)  ;;  %v819_v2 = vmov (!%p271_p9), 0   ;;  %vm326_vm1 = vcmask (!%p271_p9), 1041408  }
  0x10   : > { %274 = sbr.rel (%p271_p9) target bundleno = 830 (0x33e), region = 48  ;;  %650 = vmatprep.subr.bf16.mxu0 (!%p271_p9), %v817_v0  ;;  %652 = vmatprep.mubr.msk.bf16.mxu0 (!%p271_p9), %vm818_vm0, %v817_v0  ;;  %v315_v6 = vld [vmem:[%s1028_s1] sm:$0xf] (!%p271_p9)  ;;  %vm322_vm2 = vcmask (!%p271_p9), 31744   ;;  %s820_s26 = smov (!%p271_p9), 127   ;;  %vm375_vm3 = vcmask (!%p271_p9), 7168  }
  0x11   : > { %719 = vset.pattern.permute.xlu0 (!%p271_p9), %v819_v2  ;;  %656 = vmatprep.subr.bf16.mxu1 (!%p271_p9), %v817_v0  ;;  %s821_s10 = smov (!%p271_p9), 1   ;;  %v447_v15 = vld [vmem:[%s1033_s6] sm:$0xf] (!%p271_p9)  ;;  %vm385_vm4 = vcmask (!%p271_p9), 1043456   ;;  %vm381_vm5 = vcmask (!%p271_p9), 121856   ;;  %vm396_vm6 = vcmask (!%p271_p9), 195584  }
  0x12   : > { %319 = vperm.xlu0 (!%p271_p9), %719, %v316_v1   ;;  %660 = vmatprep.mubr.msk.bf16.mxu1 (!%p271_p9), %vm818_vm0, %v817_v0  ;;  %v390_v16 = vld [vmem:[%s1031_s4] sm:$0xff] (!%p271_p9)  ;;  %s947_s21 = sand.u32 (!%p271_p9), 1, %s807_s28   ;;  %vm443_vm7 = vcmask (!%p271_p9), 130048   ;;  %vm453_vm8 = vcmask (!%p271_p9), 64512  }
  0x13   : > { %720 = vset.pattern.permute.xlu1 (!%p271_p9), %v819_v2  ;;  %v389_v24 = vld [vmem:[%s1030_s3] sm:$0xf] (!%p271_p9)  ;;  %s632_s22 = sshll.u32 (!%p271_p9), %s947_s21, 3  ;;  %s510_s18 = scalar_lea.sflag (!%p271_p9), [#allocation5], %s947_s21 }
  0x14   : > { %v445_v34 = vld [vmem:[%s1032_s5] sm:$0x3] (!%p271_p9) }
  0x17   : > { %s309_s19 = scalar_select %p308_p10, %s890_s9, 1 }
  0x19   : > { %s633_s20 = sshll.u32 %s309_s19, 2 }
  0x1a   : > { %s311_s23 = scalar_lea.vmem %s1027_s0, %s633_s20  ;;  %s822_s20 = smov [#allocation4]  }
  0x1b   : > { %v927_v3 = vld [vmem:[%s311_s23] sm:$0xf]  ;;  %s307_s23 = scalar_lea.vmem [#allocation4], %s632_s22  ;;  %s725_s22 = sshll.u32 %s822_s20, 4  ;;  %s726_s22 = int_to_ptr.vmem [resolvable:$false] %s725_s22 }
  0x1c   : > { %v314_v4 = vpack.c.bf16 %v927_v3, %v927_v3  ;;  %s727_s24 = scalar_lea.vmem %s726_s22, 256 }
  0x1e   : > { %v328_v5 = vsel %vm326_vm1, %v314_v4, 0 }
  0x1f   : > { %651 = vmatpush3.bf16.msra.mxu0 %v328_v5 }
  0x20   : > { %664 = vmatprep.subr.bf16.mxu0 %v817_v0 }
  0x22   : > { %653 = vmatmul.mubr.msk.bf16.vlgmr.msra.gmra.mrb[0].mxu0 %vm322_vm2, %v315_v6 }
  0x23   : > { %666 = vmatprep.mubr.msk.bf16.mxu0 %vm818_vm0, %v817_v0 }
  0x91   : > { %v320_v7 = vpop.permute.xlu0 %319 }
  0xf5   : > { %v364_v8 = vpop.f32.mrb[0].mxu0 }
  0xf6   : > { %v365_v9 = vadd.f32 %v364_v8, %v320_v7  ;;  %v654_v10 = vpop.f32.mrb[1].mxu0 }
  0xf7   : > { %v367_v11 = vpop.f32.mrb[2].mxu0 }
  0xf8   : > { %v370_v12 = vmax.f32 %v365_v9, 0.0  ;;  %v655_v13 = vpop.f32.mrb[3].mxu0 }
  0xfa   : > { %v371_v14 = vpack.c.bf16 %v370_v12, %v370_v12 }
  0xfc   : > { %379 = vrot.lane.b32.xlu1 %v371_v14, %s820_s26  ;;  %373 = vrot.lane.b32.xlu0 %v371_v14, %s821_s10  ;;  %v384_v19 = vrot.slane %v371_v14, 4  ;;  %s640_s26 = sshll.u32 %s890_s9, 7  ;;  %s536_s10 = sshll.u32 %s307_s23, 4  ;;  %s537_s10 = int_to_ptr.vmem [resolvable:$true] %s536_s10 }
  0xfd   : > { %s958_s17 = scalar_lea.hbm %s1035_s8, %s640_s26  ;;  %s721_s19 = scalar_lea.vmem %s537_s10, 128 }
  0xfe   : > { %p722_p11 = scmp.ne.s32.totalorder %s537_s10, %s721_s19  ;;  %p728_p0 = scmp.lt.s32.totalorder %s537_s10, %s726_s22 }
  0xff   : > { %p729_p1 = scmp.lt.s32.totalorder %s727_s24, %s721_s19 }
 0x100   : > { %450 = vperm.xlu0 %719, %v447_v15   ;;  %393 = vperm.xlu1 %720, %v390_v16   ;;  %p723_p12 = pnand %p722_p11, %p907_p5 }
 0x101   : > { %p730_p2 = por %p729_p1, %p728_p0 }
 0x102   : > { %p724_p13 = pneg %p723_p12 }
 0x104   : > { %p731_p3 = pnand %p730_p2, %p724_p13 }
 0x16e   : > { %v380_v17 = vpop.permute.xlu1 %379  ;;  %v374_v18 = vpop.permute.xlu0 %373 }
 0x16f   : > { %v378_v20 = vsel %vm375_vm3, 0, %v374_v18  ;;  %v383_v22 = vsel %vm381_vm5, %v380_v17, 0 }
 0x170   : > { %v387_v21 = vsel %vm385_vm4, %v378_v20, %v384_v19  ;;  %v400_v23 = vsel %vm385_vm4, %v383_v22, 0 }
 0x171   : > { %657 = vmatpush3.bf16.msra.mxu1 %v387_v21 }
 0x172   : > { %658 = vmatprep.subr.bf16.mxu1 %v817_v0 }
 0x175   : > { %659 = vmatpush3.bf16.msra.mxu1 %v400_v23 }
 0x178   : > { %661 = vmatmul.mubr.msk.bf16.vlgmr.msra.gmra.mrb[0].mxu1 %vm396_vm6, %v389_v24 }
 0x17f   : > { %v394_v25 = vpop.permute.xlu1 %393 }
 0x24b   : > { %v436_v26 = vpop.f32.mrb[0].mxu1 }
 0x24c   : > { %v437_v27 = vadd.f32 %v436_v26, %v394_v25  ;;  %v662_v28 = vpop.f32.mrb[1].mxu1 }
 0x24d   : > { %v439_v29 = vpop.f32.mrb[2].mxu1 }
 0x24e   : > { %v442_v30 = vmax.f32 %v437_v27, 0.0  ;;  %v663_v31 = vpop.f32.mrb[3].mxu1 }
 0x250   : > { %v446_v32 = vpack.c.bf16 %v442_v30, %v442_v30  ;;  %444 = vst.msk [vmem:[%s307_s23] sm:$0xff] %vm443_vm7, %v442_v30 }
 0x252   : > { %v458_v33 = vsel %vm385_vm4, %v446_v32, 0 }
 0x253   : > { %665 = vmatpush3.bf16.msra.mxu0 %v458_v33 }
 0x256   : > { %667 = vmatmul.mubr.msk.bf16.vlgmr.msra.gmra.mrb[4].mxu0 %vm453_vm8, %v445_v34 }
 0x257   : > { %734 = shalt.err (!%p731_p3)
}
 0x258   : > { %s735_s23 = scalar_lea.hbm %s958_s17, 128  ;;  %s739_s12 = scalar_lea.hbm %s1035_s8, 256 }
 0x259   : > { %p736_p4 = scmp.ne.s32.totalorder %s958_s17, %s735_s23  ;;  %p740_p9 = scmp.lt.u32.totalorder %s958_s17, %s1035_s8 }
 0x25a   : > { %p741_p10 = scmp.lt.u32.totalorder %s739_s12, %s735_s23  ;;  %p743_p12 = scmp.lt.u32.totalorder %s735_s23, %s958_s17 }
 0x25b   : > { %p737_p7 = pnand %p736_p4, %p907_p5 }
 0x25c   : > { %p742_p11 = por %p741_p10, %p740_p9 }
 0x25d   : > { %p738_p8 = pneg %p737_p7 }
 0x25e   : > { %p744_p13 = por %p743_p12, %p742_p11 }
 0x260   : > { %p745_p0 = pnand %p744_p13, %p738_p8 }
 0x262   : > { %748 = shalt.err (!%p745_p0)
}
 0x263   : > { %671 = dma.vmem_to_hbm [thread:$0]  (%p907_p5), %s537_s10, 128, %s958_s17, %s510_s18   ;;  %v451_v35 = vpop.permute.xlu0 %450  ;;  %vm502_vm9 = vcmask 125952  }
 0x264   : > { %s631_s19 = sshll.u32 %s947_s21, 2  ;;  %s639_s22 = sshll.u32 %s890_s9, 6 }
 0x265   : > { %s300_s24 = scalar_lea.vmem [#allocation2], %s631_s19  ;;  %s984_s10 = scalar_lea.hbm %s1034_s7, %s639_s22 }
 0x266   : > { %s523_s23 = sshll.u32 %s300_s24, 4  ;;  %s505_s17 = scalar_lea.sflag [#allocation3], %s947_s21  ;;  %s986_s23 = int_to_ptr.vmem [resolvable:$true] %s523_s23 }
 0x267   : > { %s749_s9 = scalar_lea.vmem %s986_s23, 64  ;;  %s823_s18 = smov [#allocation2]  }
 0x268   : > { %p750_p1 = scmp.ne.s32.totalorder %s986_s23, %s749_s9  ;;  %s753_s12 = sshll.u32 %s823_s18, 4  ;;  %s754_s12 = int_to_ptr.vmem [resolvable:$false] %s753_s12 }
 0x269   : > { %s755_s13 = scalar_lea.vmem %s754_s12, 128  ;;  %p756_p4 = scmp.lt.s32.totalorder %s986_s23, %s754_s12 }
 0x26a   : > { %p751_p2 = pnand %p750_p1, %p907_p5  ;;  %p757_p7 = scmp.lt.s32.totalorder %s755_s13, %s749_s9 }
 0x26c   : > { %p752_p3 = pneg %p751_p2  ;;  %p758_p8 = por %p757_p7, %p756_p4 }
 0x26e   : > { %p759_p9 = pnand %p758_p8, %p752_p3 }
 0x329   : > { %v494_v36 = vpop.f32.mrb[4].mxu0 }
 0x32a   : > { %v495_v37 = vadd.f32 %v494_v36, %v451_v35  ;;  %v668_v38 = vpop.f32.mrb[5].mxu0 }
 0x32b   : > { %v497_v39 = vpop.f32.mrb[6].mxu0 }
 0x32c   : > { %v500_v40 = vmax.f32 %v495_v37, 0.0  ;;  %v669_v41 = vpop.f32.mrb[7].mxu0 }
 0x32e   : > { %v501_v42 = vadd.f32 %v500_v40, %v927_v3 }
 0x330   : > { %503 = vst.msk [vmem:[%s300_s24] sm:$0xf] %vm502_vm9, %v501_v42 }
 0x331   : > { %762 = shalt.err (!%p759_p9)
}
 0x332   : > { %s763_s21 = scalar_lea.hbm %s984_s10, 64  ;;  %s767_s22 = scalar_lea.hbm %s1034_s7, 128 }
 0x333   : > { %p764_p10 = scmp.ne.s32.totalorder %s984_s10, %s763_s21  ;;  %p768_p13 = scmp.lt.u32.totalorder %s984_s10, %s1034_s7 }
 0x334   : > { %p769_p0 = scmp.lt.u32.totalorder %s767_s22, %s763_s21  ;;  %p771_p2 = scmp.lt.u32.totalorder %s763_s21, %s984_s10 }
 0x335   : > { %p765_p11 = pnand %p764_p10, %p907_p5 }
 0x336   : > { %p770_p1 = por %p769_p0, %p768_p13 }
 0x337   : > { %p766_p12 = pneg %p765_p11 }
 0x338   : > { %p772_p3 = por %p771_p2, %p770_p1 }
 0x33a   : > { %p773_p4 = pnand %p772_p3, %p766_p12 }
 0x33c   : > { %776 = shalt.err (!%p773_p4)
}
 0x33d   : > { %670 = dma.vmem_to_hbm [thread:$0]  (%p907_p5), %s986_s23, 64, %s984_s10, %s505_s17  }
 0x33e PF: > { %p681_p7 = scmp.ge.s32.totalorder %s815_s30, 2  ;;  %s548_s26 = sand.u32 1, %s803_s27  }
 0x33f   : > { %s549_s9 = scalar_lea.sflag [#allocation3], %s548_s26 }
 0x340   : > { %p675_p8 = pnand %p681_p7, %p911_p6 }
 0x342   : > { %794 = dma.done.wait (!%p675_p8), %s549_s9, 64  }
 0x343   : > { %796 = vsyncadd (!%p675_p8), %s549_s9, 4294967232  ;;  %s558_s18 = scalar_lea.sflag [#allocation5], %s548_s26 }
 0x344   : > { %798 = dma.done.wait (!%p675_p8), %s558_s18, 128  }
 0x345   : > { %800 = vsyncadd (!%p675_p8), %s558_s18, 4294967168  ;;  %p22_p5 = scmp.ge.s32.totalorder %s894_s11, 4   ;;  %s1038_s27 = smov %s807_s28 }
 0x346   : > { %s1039_s28 = smov %s811_s29  ;;  %s1040_s29 = smov %s905_s14 }
 0x347   : > { %s1041_s30 = smov %s894_s11  ;;  %24 = sbr.rel (!%p22_p5) target bundleno = 5 (0x5), region = 100 }
 0x34e   :  { %563 = vsyncpa [#allocation3], 1 }
 0x34f   :  { %565 = vsyncpa [#allocation3 + $0x1], 1 }
 0x350   :  { %566 = vsyncpa [#allocation5], 1 }
 0x351   :  { %568 = vsyncpa [#allocation5 + $0x1], 1 }

</bundles_post_ra>
